<compile_context>
chip_gen: v7x
topology: tpu7x:2x2x1
jax: 0.10.0
libtpu: 0.0.40
codegen_flags: <defaults>
</compile_context>

<pallas_src>
import jax
import jax.numpy as jnp
from jax import lax
from jax.experimental import pallas as pl
from jax.experimental.pallas import tpu as pltpu


# --------------------------------------------------------------------------- #
# In-kernel math helpers (shared by both kernel variants)
# --------------------------------------------------------------------------- #
def _layer_norm(z, gamma, beta, d_real, eps=1e-5):
    """LayerNorm over the last (possibly zero-padded) axis.

    Uses the real feature count `d_real` for the statistics and the
    E[z^2] - mu^2 variance form, which is exact when padded lanes of `z` are
    zero. gamma/beta are zero on pad lanes, so padded output lanes stay zero.
    """
    inv_d = 1.0 / d_real
    mu = jnp.sum(z, axis=-1, keepdims=True) * inv_d
    ms = jnp.sum(z * z, axis=-1, keepdims=True) * inv_d
    var = ms - mu * mu
    return (z - mu) * lax.rsqrt(var + jnp.float32(eps)) * gamma + beta


def _attention_norm1(x, gamma1, beta1, d_real):
    """Scaled-dot softmax self-attention (the module's 'AutoCorrelation'),
    residual add, LayerNorm1.  x: (Bt, S, Dp) fp32 with zero pad lanes."""
    scale = d_real ** -0.5
    # Fold 1/sqrt(D) into q: scales an S*D tensor instead of S*S scores.
    q = (x * scale).astype(jnp.bfloat16)
    kv = x.astype(jnp.bfloat16)
    # Contract the last dim of both operands -> no materialized k transpose.
    scores = jnp.einsum("bqd,bkd->bqk", q, kv,
                        preferred_element_type=jnp.float32)          # (Bt,S,S)
    m = jnp.max(scores, axis=-1, keepdims=True)
    e = jnp.exp(scores - m)
    attn = e / jnp.sum(e, axis=-1, keepdims=True)                    # exact div
    ac = jnp.einsum("bqk,bkd->bqd", attn.astype(jnp.bfloat16), kv,
                    preferred_element_type=jnp.float32)              # (Bt,S,Dp)
    # TODO(synk): for very long S (>~512) convert to a KV-tiled online-softmax
    # loop so the (S,S) scores never materialize; unnecessary at these shapes.
    return _layer_norm(ac + x, gamma1, beta1, d_real)


# --------------------------------------------------------------------------- #
# Kernel variant 1: fully fused (weights resident in VMEM, grid = (nb,))
# --------------------------------------------------------------------------- #
def _make_fused_kernel(d_real):
    def kernel(x_ref, w1_ref, b1_ref, w2_ref, b2_ref,
               g1_ref, be1_ref, g2_ref, be2_ref, o_ref):
        x = x_ref[...]                                                # (Bt,S,Dp) f32
        y1 = _attention_norm1(x, g1_ref[0], be1_ref[0], d_real)
        bt, s, dp = y1.shape
        # Fuse batch rows into the matmul M dimension (fills MXU rows).
        y1f = y1.reshape(bt * s, dp)
        h = jnp.dot(y1f.astype(jnp.bfloat16), w1_ref[...],
                    preferred_element_type=jnp.float32) + b1_ref[0]   # (Bt*S,FF)
        h = jnp.maximum(h, 0.0).astype(jnp.bfloat16)
        f = jnp.dot(h, w2_ref[...],
                    preferred_element_type=jnp.float32) + b2_ref[0]   # (Bt*S,Dp)
        y2 = _layer_norm(f.reshape(bt, s, dp) + y1,
                         g2_ref[0], be2_ref[0], d_real)
        o_ref[...] = y2.astype(o_ref.dtype)
    return kernel


# --------------------------------------------------------------------------- #
# Kernel variant 2: d_ff-tiled fallback (grid = (nb, n_ff)), only used when the
# full bf16 W1/W2 do not fit the VMEM budget (very large models).
# --------------------------------------------------------------------------- #
def _make_ff_tiled_kernel(d_real):
    def kernel(x_ref, w1_ref, b1_ref, w2_ref, b2_ref,
               g1_ref, be1_ref, g2_ref, be2_ref, o_ref,
               y1_f32_ref, y1_bf16_ref, acc_ref):
        t = pl.program_id(1)

        # ---- d_ff tile 0: attention + LN1, cache in scratch -----------------
        @pl.when(t == 0)
        def _attention_and_norm1():
            x = x_ref[...]
            y1 = _attention_norm1(x, g1_ref[0], be1_ref[0], d_real)
            bt, s, dp = y1.shape
            y1_f32_ref[...] = y1
            y1_bf16_ref[...] = y1.reshape(bt * s, dp).astype(jnp.bfloat16)
            acc_ref[...] = jnp.zeros_like(acc_ref)

        # ---- FFN partial product for the current d_ff tile -------------------
        h = jnp.dot(y1_bf16_ref[...], w1_ref[...],
                    preferred_element_type=jnp.float32) + b1_ref[0]
        h = jnp.maximum(h, 0.0).astype(jnp.bfloat16)
        acc_ref[...] += jnp.dot(h, w2_ref[...],
                                preferred_element_type=jnp.float32)

        # ---- last d_ff tile: bias + residual + LN2, store --------------------
        @pl.when(t == pl.num_programs(1) - 1)
        def _norm2_and_store():
            y1 = y1_f32_ref[...]
            bt, s, dp = y1.shape
            f = (acc_ref[...] + b2_ref[0]).reshape(bt, s, dp)
            o_ref[...] = _layer_norm(f + y1, g2_ref[0], be2_ref[0],
                                     d_real).astype(o_ref.dtype)
    return kernel


# --------------------------------------------------------------------------- #
# Wrapper helpers
# --------------------------------------------------------------------------- #
def _round_up(n, m):
    return (n + m - 1) // m * m


def _pad_to(a, shape):
    pads = [(0, t - s) for s, t in zip(a.shape, shape)]
    if all(p == (0, 0) for p in pads):
        return a
    return jnp.pad(a, pads)


def _physical_vmem_bytes():
    """Generation-aware physical per-core VMEM (conservative fallback = v7x)."""
    try:
        return int(pltpu.get_tpu_info().vmem_capacity_bytes)
    except Exception:
        return 64 * 1024 * 1024


def _largest_divisor_leq(n, cap):
    cap = max(1, min(n, int(cap)))
    for d in range(cap, 0, -1):
        if n % d == 0:
            return d
    return 1


def _largest_ff_tile(d_ffp, cap_elems):
    """Largest multiple of 128 that divides d_ffp and is <= cap_elems."""
    cap_elems = max(128, int(cap_elems))
    best, t = 128, 128
    while t <= d_ffp:
        if d_ffp % t == 0 and t <= cap_elems:
            best = t
        t += 128
    return best


# --------------------------------------------------------------------------- #
# Public entry point
# --------------------------------------------------------------------------- #
def autoformer_encoder_layer(x, params, *, batch_tile=None, ff_tile=None,
                             vmem_limit_bytes=None):
    """x: (B, S, D) float32; params: dict of fp32 weights (see init_params)."""
    B, S, D = x.shape
    d_ff = params["w1"].shape[1]

    # Lane-dense padding of the feature dims (zeros); sliced off at the end.
    Dp = _round_up(D, 128)
    d_ffp = _round_up(d_ff, 128)

    # bf16 weights (MXU-native, halves weight DMA bytes), zero-padded.
    w1 = _pad_to(params["w1"].astype(jnp.bfloat16), (Dp, d_ffp))
    b1 = _pad_to(params["b1"].astype(jnp.float32), (1, d_ffp))
    w2 = _pad_to(params["w2"].astype(jnp.bfloat16), (d_ffp, Dp))
    b2 = _pad_to(params["b2"].astype(jnp.float32), (1, Dp))
    # gamma/beta are zero on pad lanes so padded output lanes stay zero.
    g1 = _pad_to(params["g1"].astype(jnp.float32), (1, Dp))
    be1 = _pad_to(params["be1"].astype(jnp.float32), (1, Dp))
    g2 = _pad_to(params["g2"].astype(jnp.float32), (1, Dp))
    be2 = _pad_to(params["be2"].astype(jnp.float32), (1, Dp))
    xp = _pad_to(x.astype(jnp.float32), (B, S, Dp))

    # ---- generation-aware tiling / VMEM budgeting ---------------------------
    budget = (3 * _physical_vmem_bytes()) // 4   # headroom for Mosaic scratch

    # Rough live bytes per batch row in one grid step: double-buffered fp32
    # x/out blocks, scores + exp intermediates, fp32 FFN hidden, LN temps.
    row_bytes = 4 * S * (8 * Dp + 2 * S + d_ffp)
    if batch_tile is None:
        batch_tile = _largest_divisor_leq(
            B, max(1, (budget // 2) // max(row_bytes, 1)))
    assert B % batch_tile == 0, "batch_tile must divide B"
    act_bytes = batch_tile * row_bytes

    # Full bf16 W1+W2 footprint if kept resident (assume double-buffered).
    full_weight_bytes = 2 * 2 * 2 * Dp * d_ffp
    if ff_tile is None:
        if full_weight_bytes <= budget - act_bytes:
            ff_tile = d_ffp                                   # collapsed: n_ff = 1
        else:
            ff_tile = _largest_ff_tile(
                d_ffp, max(128, (budget - act_bytes) // (8 * Dp)))
    assert d_ffp % ff_tile == 0, "ff_tile must divide padded d_ff"
    assert ff_tile == d_ffp or ff_tile % 128 == 0, "ff_tile must be lane-aligned"
    n_ff = d_ffp // ff_tile
    nb = B // batch_tile

    weight_tile_bytes = 2 * 2 * 2 * Dp * ff_tile              # 2 arrays x 2 bufs
    if vmem_limit_bytes is None:
        est = weight_tile_bytes + act_bytes + (4 << 20)
        vmem_limit_bytes = int(min(budget, max(32 << 20, est)))

    # ---- grid / specs --------------------------------------------------------
    if n_ff == 1:
        kernel = _make_fused_kernel(D)
        grid = (nb,)
        cmap = lambda b: (0, 0)
        in_specs = [
            pl.BlockSpec((batch_tile, S, Dp), lambda b: (b, 0, 0)),   # x
            # Constant block index across the whole grid -> W1/W2 DMA'd once.
            pl.BlockSpec((Dp, d_ffp), cmap),                          # W1
            pl.BlockSpec((1, d_ffp), cmap),                           # b1
            pl.BlockSpec((d_ffp, Dp), cmap),                          # W2
            pl.BlockSpec((1, Dp), cmap),                              # b2
            pl.BlockSpec((1, Dp), cmap),                              # gamma1
            pl.BlockSpec((1, Dp), cmap),                              # beta1
            pl.BlockSpec((1, Dp), cmap),                              # gamma2
            pl.BlockSpec((1, Dp), cmap),                              # beta2
        ]
        out_specs = pl.BlockSpec((batch_tile, S, Dp), lambda b: (b, 0, 0))
        scratch_shapes = []
        # Batch axis "parallel" (megacore-shardable on v7x).
        dim_sem = ("parallel",)
    else:
        kernel = _make_ff_tiled_kernel(D)
        grid = (nb, n_ff)
        cmap = lambda b, t: (0, 0)
        in_specs = [
            pl.BlockSpec((batch_tile, S, Dp), lambda b, t: (b, 0, 0)),  # x
            pl.BlockSpec((Dp, ff_tile), lambda b, t: (0, t)),           # W1 tile
            pl.BlockSpec((1, ff_tile), lambda b, t: (0, t)),            # b1 tile
            pl.BlockSpec((ff_tile, Dp), lambda b, t: (t, 0)),           # W2 tile
            pl.BlockSpec((1, Dp), cmap),                                # b2
            pl.BlockSpec((1, Dp), cmap),                                # gamma1
            pl.BlockSpec((1, Dp), cmap),                                # beta1
            pl.BlockSpec((1, Dp), cmap),                                # gamma2
            pl.BlockSpec((1, Dp), cmap),                                # beta2
        ]
        out_specs = pl.BlockSpec((batch_tile, S, Dp), lambda b, t: (b, 0, 0))
        scratch_shapes = [
            pltpu.VMEM((batch_tile, S, Dp), jnp.float32),       # y1 fp32
            pltpu.VMEM((batch_tile * S, Dp), jnp.bfloat16),     # y1 bf16 operand
            pltpu.VMEM((batch_tile * S, Dp), jnp.float32),      # FFN accumulator
        ]
        dim_sem = ("parallel", "arbitrary")

    flops = int(B * (4 * S * S * Dp + 4 * S * Dp * d_ffp))
    transcendentals = int(B * S * S + 4 * B * S)
    bytes_accessed = int(2 * B * S * Dp * 4
                         + (1 if n_ff == 1 else nb) * 2 * 2 * Dp * d_ffp
                         + 4 * (d_ffp + 9 * Dp))

    out = pl.pallas_call(
        kernel,
        out_shape=jax.ShapeDtypeStruct((B, S, Dp), x.dtype),
        grid_spec=pltpu.PrefetchScalarGridSpec(
            num_scalar_prefetch=0,
            grid=grid,
            in_specs=in_specs,
            out_specs=out_specs,
            scratch_shapes=scratch_shapes),
        compiler_params=pltpu.CompilerParams(
            dimension_semantics=dim_sem,
            vmem_limit_bytes=int(vmem_limit_bytes)),
        cost_estimate=pl.CostEstimate(
            flops=flops,
            transcendentals=transcendentals,
            bytes_accessed=bytes_accessed),
    )(xp, w1, b1, w2, b2, g1, be1, g2, be2)

    return out[..., :D] if Dp != D else out


# --------------------------------------------------------------------------- #
# Parameters and pure-JAX reference
# --------------------------------------------------------------------------- #
def init_params(key, d_model):
    """Deterministic synthetic weights matching the nn.Module shapes."""
    k1, k2, k3, k4 = jax.random.split(key, 4)
    d_ff = 4 * d_model
    w1 = (jax.random.normal(k1, (d_model, d_ff), jnp.float32)
          * (1.0 / jnp.sqrt(d_model)))
    b1 = jax.random.normal(k2, (1, d_ff), jnp.float32) * 0.01
    w2 = (jax.random.normal(k3, (d_ff, d_model), jnp.float32)
          * (1.0 / jnp.sqrt(d_ff)))
    b2 = jax.random.normal(k4, (1, d_model), jnp.float32) * 0.01
    g1 = jnp.ones((1, d_model), jnp.float32)
    be1 = jnp.zeros((1, d_model), jnp.float32)
    g2 = jnp.ones((1, d_model), jnp.float32)
    be2 = jnp.zeros((1, d_model), jnp.float32)
    return dict(w1=w1, b1=b1, w2=w2, b2=b2, g1=g1, be1=be1, g2=g2, be2=be2)


def reference_forward(x, p, matmul_dtype=jnp.float32):
    """Pure-JAX reference (eval-mode dropout = identity).

    matmul_dtype=float32  -> exact module semantics.
    matmul_dtype=bfloat16 -> mirrors the kernel's bf16 MXU operands.
    """
    D = x.shape[-1]
    cast = lambda a: a.astype(matmul_dtype)
    scale = D ** -0.5
    scores = jnp.einsum("bqd,bkd->bqk", cast(x * scale), cast(x),
                        preferred_element_type=jnp.float32)
    attn = jax.nn.softmax(scores, axis=-1)
    ac = jnp.einsum("bqk,bkd->bqd", cast(attn), cast(x),
                    preferred_element_type=jnp.float32)

    def ln(z, g, b):
        mu = z.mean(-1, keepdims=True)
        var = ((z - mu) ** 2).mean(-1, keepdims=True)
        return (z - mu) / jnp.sqrt(var + 1e-5) * g + b

    y1 = ln(ac + x, p["g1"][0], p["be1"][0])
    h = jnp.maximum(jnp.dot(cast(y1), cast(p["w1"]),
                            preferred_element_type=jnp.float32) + p["b1"][0], 0.0)
    f = jnp.dot(cast(h), cast(p["w2"]),
                preferred_element_type=jnp.float32) + p["b2"][0]
    return ln(f + y1, p["g2"][0], p["be2"][0])


# --------------------------------------------------------------------------- #
# Self-test
# --------------------------------------------------------------------------- #
if __name__ == "__main__":
    key = jax.random.PRNGKey(0)
    kx, kp, kx2, kp2 = jax.random.split(key, 4)

    # --- test 1: collapsed fast path (weights resident, single-step grid) ----
    B, S, D = 2, 8, 32   # batch, seq_len, d_model (nhead unused by the forward)
    x = jax.random.normal(kx, (B, S, D), jnp.float32)
    params = init_params(kp, D)

    out = jax.block_until_ready(autoformer_encoder_layer(x, params))
    assert out.shape == (B, S, D)

    ref_bf16 = reference_forward(x, params, matmul_dtype=jnp.bfloat16)
    err_bf16 = float(jnp.max(jnp.abs(out - ref_bf16)))
    assert err_bf16 < 1e-2, f"fused path vs bf16-emulated reference: {err_bf16}"

    ref_f32 = reference_forward(x, params, matmul_dtype=jnp.float32)
    err_f32 = float(jnp.max(jnp.abs(out - ref_f32)))
    assert err_f32 < 1e-1, f"fused path vs fp32 reference: {err_f32}"

    # --- test 2: force the d_ff-tiled fallback path (grid=(2, 2)) ------------
    B2, S2, D2 = 2, 8, 64            # d_ff = 256 -> two 128-wide d_ff tiles
    x2 = jax.random.normal(kx2, (B2, S2, D2), jnp.float32)
    params2 = init_params(kp2, D2)
    out2 = jax.block_until_ready(
        autoformer_encoder_layer(x2, params2, batch_tile=1, ff_tile=128))
    assert out2.shape == (B2, S2, D2)
    ref2 = reference_forward(x2, params2, matmul_dtype=jnp.bfloat16)
    err2 = float(jnp.max(jnp.abs(out2 - ref2)))
    assert err2 < 1e-2, f"tiled path vs bf16-emulated reference: {err2}"

    print("KERNEL_OK")
</pallas_src>

<mosaic_0001>
module attributes {stable_mosaic.version = 11 : i64} {
  func.func @kernel(%arg0: i32, %arg1: memref<2x8x128xf32, #tpu.memory_space<vmem>>, %arg2: memref<128x128xbf16, #tpu.memory_space<vmem>>, %arg3: memref<1x128xf32, #tpu.memory_space<vmem>>, %arg4: memref<128x128xbf16, #tpu.memory_space<vmem>>, %arg5: memref<1x128xf32, #tpu.memory_space<vmem>>, %arg6: memref<1x128xf32, #tpu.memory_space<vmem>>, %arg7: memref<1x128xf32, #tpu.memory_space<vmem>>, %arg8: memref<1x128xf32, #tpu.memory_space<vmem>>, %arg9: memref<1x128xf32, #tpu.memory_space<vmem>>, %arg10: memref<2x8x128xf32, #tpu.memory_space<vmem>>) attributes {dimension_semantics = [#tpu.dimension_semantics<parallel>], iteration_bounds = array<i64: 1>, scalar_prefetch = 0 : i64, scratch_operands = 0 : i64, tpu.core_type = #tpu.core_type<tc>, window_params = [{transform_indices = @transform_0, window_bounds = array<i64: 2, 8, 128>}, {pipeline_mode = #tpu.pipeline_mode<synchronous>, transform_indices = @transform_1, window_bounds = array<i64: 128, 128>}, {pipeline_mode = #tpu.pipeline_mode<synchronous>, transform_indices = @transform_2, window_bounds = array<i64: 1, 128>}, {pipeline_mode = #tpu.pipeline_mode<synchronous>, transform_indices = @transform_3, window_bounds = array<i64: 128, 128>}, {pipeline_mode = #tpu.pipeline_mode<synchronous>, transform_indices = @transform_4, window_bounds = array<i64: 1, 128>}, {pipeline_mode = #tpu.pipeline_mode<synchronous>, transform_indices = @transform_5, window_bounds = array<i64: 1, 128>}, {pipeline_mode = #tpu.pipeline_mode<synchronous>, transform_indices = @transform_6, window_bounds = array<i64: 1, 128>}, {pipeline_mode = #tpu.pipeline_mode<synchronous>, transform_indices = @transform_7, window_bounds = array<i64: 1, 128>}, {pipeline_mode = #tpu.pipeline_mode<synchronous>, transform_indices = @transform_8, window_bounds = array<i64: 1, 128>}, {transform_indices = @transform_9, window_bounds = array<i64: 2, 8, 128>}]} {
    %c0 = arith.constant 0 : index
    %c0_0 = arith.constant 0 : index
    %c0_1 = arith.constant 0 : index
    %0 = vector.load %arg1[%c0, %c0_0, %c0_1] : memref<2x8x128xf32, #tpu.memory_space<vmem>>, vector<2x8x128xf32>
    %c0_2 = arith.constant 0 : index
    %c0_3 = arith.constant 0 : index
    %1 = vector.load %arg6[%c0_2, %c0_3] : memref<1x128xf32, #tpu.memory_space<vmem>>, vector<1x128xf32>
    %2 = vector.shape_cast %1 : vector<1x128xf32> to vector<128xf32>
    %c0_4 = arith.constant 0 : index
    %c0_5 = arith.constant 0 : index
    %3 = vector.load %arg7[%c0_4, %c0_5] : memref<1x128xf32, #tpu.memory_space<vmem>>, vector<1x128xf32>
    %4 = vector.shape_cast %3 : vector<1x128xf32> to vector<128xf32>
    %cst = arith.constant 0.176776692 : f32
    %5 = vector.broadcast %cst : f32 to vector<2x8x128xf32>
    %6 = arith.mulf %0, %5 : vector<2x8x128xf32>
    %7 = arith.truncf %6 : vector<2x8x128xf32> to vector<2x8x128xbf16>
    %8 = arith.truncf %0 : vector<2x8x128xf32> to vector<2x8x128xbf16>
    "tpu.trace_start"() <{level = 10 : i32, message = "bqd,bkd->bqk"}> : () -> ()
    %cst_6 = arith.constant dense<0.000000e+00> : vector<2x8x8xf32>
    %9 = tpu.matmul %7, %8, %cst_6 {dimension_numbers = #tpu.dot_dimension_numbers<[2], [2], [1], [1], [0, 0, 0, 1, 1, 1], [0], [0]>} : vector<2x8x128xbf16>, vector<2x8x128xbf16>, vector<2x8x8xf32> -> vector<2x8x8xf32>
    "tpu.trace_stop"() : () -> ()
    %cst_7 = arith.constant dense<0xFF800000> : vector<2x8xf32>
    %10 = vector.multi_reduction <maximumf>, %9, %cst_7 [2] : vector<2x8x8xf32> to vector<2x8xf32>
    %11 = vector.shape_cast %10 : vector<2x8xf32> to vector<2x8x1xf32>
    %12 = vector.broadcast %11 : vector<2x8x1xf32> to vector<2x8x8xf32>
    %13 = arith.subf %9, %12 : vector<2x8x8xf32>
    %14 = math.exp %13 : vector<2x8x8xf32>
    %cst_8 = arith.constant dense<0.000000e+00> : vector<2x8xf32>
    %15 = vector.multi_reduction <add>, %14, %cst_8 [2] : vector<2x8x8xf32> to vector<2x8xf32>
    %16 = vector.shape_cast %15 : vector<2x8xf32> to vector<2x8x1xf32>
    %17 = vector.broadcast %16 : vector<2x8x1xf32> to vector<2x8x8xf32>
    %18 = arith.divf %14, %17 : vector<2x8x8xf32>
    %19 = arith.truncf %18 : vector<2x8x8xf32> to vector<2x8x8xbf16>
    "tpu.trace_start"() <{level = 10 : i32, message = "bqk,bkd->bqd"}> : () -> ()
    %cst_9 = arith.constant dense<0.000000e+00> : vector<2x8x128xf32>
    %20 = tpu.matmul %19, %8, %cst_9 {dimension_numbers = #tpu.dot_dimension_numbers<[2], [1], [1], [2], [0, 0, 0, 1, 1, 2], [0], [0]>} : vector<2x8x8xbf16>, vector<2x8x128xbf16>, vector<2x8x128xf32> -> vector<2x8x128xf32>
    "tpu.trace_stop"() : () -> ()
    %21 = arith.addf %20, %0 : vector<2x8x128xf32>
    %cst_10 = arith.constant dense<0.000000e+00> : vector<2x8xf32>
    %22 = vector.multi_reduction <add>, %21, %cst_10 [2] : vector<2x8x128xf32> to vector<2x8xf32>
    %23 = vector.shape_cast %22 : vector<2x8xf32> to vector<2x8x1xf32>
    %cst_11 = arith.constant 3.125000e-02 : f32
    %24 = vector.broadcast %cst_11 : f32 to vector<2x8x1xf32>
    %25 = arith.mulf %23, %24 : vector<2x8x1xf32>
    %26 = arith.mulf %21, %21 : vector<2x8x128xf32>
    %cst_12 = arith.constant dense<0.000000e+00> : vector<2x8xf32>
    %27 = vector.multi_reduction <add>, %26, %cst_12 [2] : vector<2x8x128xf32> to vector<2x8xf32>
    %28 = vector.shape_cast %27 : vector<2x8xf32> to vector<2x8x1xf32>
    %cst_13 = arith.constant 3.125000e-02 : f32
    %29 = vector.broadcast %cst_13 : f32 to vector<2x8x1xf32>
    %30 = arith.mulf %28, %29 : vector<2x8x1xf32>
    %31 = arith.mulf %25, %25 : vector<2x8x1xf32>
    %32 = arith.subf %30, %31 : vector<2x8x1xf32>
    %33 = vector.broadcast %25 : vector<2x8x1xf32> to vector<2x8x128xf32>
    %34 = arith.subf %21, %33 : vector<2x8x128xf32>
    %cst_14 = arith.constant 9.99999974E-6 : f32
    %35 = vector.broadcast %cst_14 : f32 to vector<2x8x1xf32>
    %36 = arith.addf %32, %35 : vector<2x8x1xf32>
    %37 = math.rsqrt %36 : vector<2x8x1xf32>
    %38 = vector.broadcast %37 : vector<2x8x1xf32> to vector<2x8x128xf32>
    %39 = arith.mulf %34, %38 : vector<2x8x128xf32>
    %40 = vector.shape_cast %2 : vector<128xf32> to vector<1x1x128xf32>
    %41 = vector.broadcast %40 : vector<1x1x128xf32> to vector<2x8x128xf32>
    %42 = arith.mulf %39, %41 : vector<2x8x128xf32>
    %43 = vector.shape_cast %4 : vector<128xf32> to vector<1x1x128xf32>
    %44 = vector.broadcast %43 : vector<1x1x128xf32> to vector<2x8x128xf32>
    %45 = arith.addf %42, %44 : vector<2x8x128xf32>
    %46 = vector.shape_cast %45 : vector<2x8x128xf32> to vector<16x128xf32>
    %47 = arith.truncf %46 : vector<16x128xf32> to vector<16x128xbf16>
    %c0_15 = arith.constant 0 : index
    %c0_16 = arith.constant 0 : index
    %48 = vector.load %arg2[%c0_15, %c0_16] : memref<128x128xbf16, #tpu.memory_space<vmem>>, vector<128x128xbf16>
    %cst_17 = arith.constant dense<0.000000e+00> : vector<16x128xf32>
    %49 = tpu.matmul %47, %48, %cst_17 {dimension_numbers = #tpu.dot_dimension_numbers<[1], [0], [0], [1], [0, 0, 1, 1], [], []>} : vector<16x128xbf16>, vector<128x128xbf16>, vector<16x128xf32> -> vector<16x128xf32>
    %c0_18 = arith.constant 0 : index
    %c0_19 = arith.constant 0 : index
    %50 = vector.load %arg3[%c0_18, %c0_19] : memref<1x128xf32, #tpu.memory_space<vmem>>, vector<1x128xf32>
    %51 = vector.shape_cast %50 : vector<1x128xf32> to vector<128xf32>
    %52 = vector.shape_cast %51 : vector<128xf32> to vector<1x128xf32>
    %53 = vector.broadcast %52 : vector<1x128xf32> to vector<16x128xf32>
    %54 = arith.addf %49, %53 : vector<16x128xf32>
    %cst_20 = arith.constant 0.000000e+00 : f32
    %55 = vector.broadcast %cst_20 : f32 to vector<16x128xf32>
    %56 = arith.maximumf %54, %55 : vector<16x128xf32>
    %57 = arith.truncf %56 : vector<16x128xf32> to vector<16x128xbf16>
    %c0_21 = arith.constant 0 : index
    %c0_22 = arith.constant 0 : index
    %58 = vector.load %arg4[%c0_21, %c0_22] : memref<128x128xbf16, #tpu.memory_space<vmem>>, vector<128x128xbf16>
    %cst_23 = arith.constant dense<0.000000e+00> : vector<16x128xf32>
    %59 = tpu.matmul %57, %58, %cst_23 {dimension_numbers = #tpu.dot_dimension_numbers<[1], [0], [0], [1], [0, 0, 1, 1], [], []>} : vector<16x128xbf16>, vector<128x128xbf16>, vector<16x128xf32> -> vector<16x128xf32>
    %c0_24 = arith.constant 0 : index
    %c0_25 = arith.constant 0 : index
    %60 = vector.load %arg5[%c0_24, %c0_25] : memref<1x128xf32, #tpu.memory_space<vmem>>, vector<1x128xf32>
    %61 = vector.shape_cast %60 : vector<1x128xf32> to vector<128xf32>
    %62 = vector.shape_cast %61 : vector<128xf32> to vector<1x128xf32>
    %63 = vector.broadcast %62 : vector<1x128xf32> to vector<16x128xf32>
    %64 = arith.addf %59, %63 : vector<16x128xf32>
    %65 = vector.shape_cast %64 : vector<16x128xf32> to vector<2x8x128xf32>
    %66 = arith.addf %65, %45 : vector<2x8x128xf32>
    %c0_26 = arith.constant 0 : index
    %c0_27 = arith.constant 0 : index
    %67 = vector.load %arg8[%c0_26, %c0_27] : memref<1x128xf32, #tpu.memory_space<vmem>>, vector<1x128xf32>
    %68 = vector.shape_cast %67 : vector<1x128xf32> to vector<128xf32>
    %c0_28 = arith.constant 0 : index
    %c0_29 = arith.constant 0 : index
    %69 = vector.load %arg9[%c0_28, %c0_29] : memref<1x128xf32, #tpu.memory_space<vmem>>, vector<1x128xf32>
    %70 = vector.shape_cast %69 : vector<1x128xf32> to vector<128xf32>
    %cst_30 = arith.constant dense<0.000000e+00> : vector<2x8xf32>
    %71 = vector.multi_reduction <add>, %66, %cst_30 [2] : vector<2x8x128xf32> to vector<2x8xf32>
    %72 = vector.shape_cast %71 : vector<2x8xf32> to vector<2x8x1xf32>
    %cst_31 = arith.constant 3.125000e-02 : f32
    %73 = vector.broadcast %cst_31 : f32 to vector<2x8x1xf32>
    %74 = arith.mulf %72, %73 : vector<2x8x1xf32>
    %75 = arith.mulf %66, %66 : vector<2x8x128xf32>
    %cst_32 = arith.constant dense<0.000000e+00> : vector<2x8xf32>
    %76 = vector.multi_reduction <add>, %75, %cst_32 [2] : vector<2x8x128xf32> to vector<2x8xf32>
    %77 = vector.shape_cast %76 : vector<2x8xf32> to vector<2x8x1xf32>
    %cst_33 = arith.constant 3.125000e-02 : f32
    %78 = vector.broadcast %cst_33 : f32 to vector<2x8x1xf32>
    %79 = arith.mulf %77, %78 : vector<2x8x1xf32>
    %80 = arith.mulf %74, %74 : vector<2x8x1xf32>
    %81 = arith.subf %79, %80 : vector<2x8x1xf32>
    %82 = vector.broadcast %74 : vector<2x8x1xf32> to vector<2x8x128xf32>
    %83 = arith.subf %66, %82 : vector<2x8x128xf32>
    %cst_34 = arith.constant 9.99999974E-6 : f32
    %84 = vector.broadcast %cst_34 : f32 to vector<2x8x1xf32>
    %85 = arith.addf %81, %84 : vector<2x8x1xf32>
    %86 = math.rsqrt %85 : vector<2x8x1xf32>
    %87 = vector.broadcast %86 : vector<2x8x1xf32> to vector<2x8x128xf32>
    %88 = arith.mulf %83, %87 : vector<2x8x128xf32>
    %89 = vector.shape_cast %68 : vector<128xf32> to vector<1x1x128xf32>
    %90 = vector.broadcast %89 : vector<1x1x128xf32> to vector<2x8x128xf32>
    %91 = arith.mulf %88, %90 : vector<2x8x128xf32>
    %92 = vector.shape_cast %70 : vector<128xf32> to vector<1x1x128xf32>
    %93 = vector.broadcast %92 : vector<1x1x128xf32> to vector<2x8x128xf32>
    %94 = arith.addf %91, %93 : vector<2x8x128xf32>
    %c0_35 = arith.constant 0 : index
    %c0_36 = arith.constant 0 : index
    %c0_37 = arith.constant 0 : index
    %95 = vector.load %arg10[%c0_35, %c0_36, %c0_37] : memref<2x8x128xf32, #tpu.memory_space<vmem>>, vector<2x8x128xf32>
    tpu.vector_store %arg10[%c0_35, %c0_36, %c0_37], %94 {strides = array<i32>} : memref<2x8x128xf32, #tpu.memory_space<vmem>>, vector<2x8x128xf32>,
    return
  }
  func.func @transform_0(%arg0: i32) -> (i32, i32, i32) {
    %c0_i32 = arith.constant 0 : i32
    %c0_i32_0 = arith.constant 0 : i32
    %c0_i32_1 = arith.constant 0 : i32
    return %arg0, %c0_i32, %c0_i32_0 : i32, i32, i32
  }
  func.func @transform_1(%arg0: i32) -> (i32, i32) {
    %c0_i32 = arith.constant 0 : i32
    %c0_i32_0 = arith.constant 0 : i32
    %c0_i32_1 = arith.constant 0 : i32
    return %c0_i32, %c0_i32_0 : i32, i32
  }
  func.func @transform_2(%arg0: i32) -> (i32, i32) {
    %c0_i32 = arith.constant 0 : i32
    %c0_i32_0 = arith.constant 0 : i32
    %c0_i32_1 = arith.constant 0 : i32
    return %c0_i32, %c0_i32_0 : i32, i32
  }
  func.func @transform_3(%arg0: i32) -> (i32, i32) {
    %c0_i32 = arith.constant 0 : i32
    %c0_i32_0 = arith.constant 0 : i32
    %c0_i32_1 = arith.constant 0 : i32
    return %c0_i32, %c0_i32_0 : i32, i32
  }
  func.func @transform_4(%arg0: i32) -> (i32, i32) {
    %c0_i32 = arith.constant 0 : i32
    %c0_i32_0 = arith.constant 0 : i32
    %c0_i32_1 = arith.constant 0 : i32
    return %c0_i32, %c0_i32_0 : i32, i32
  }
  func.func @transform_5(%arg0: i32) -> (i32, i32) {
    %c0_i32 = arith.constant 0 : i32
    %c0_i32_0 = arith.constant 0 : i32
    %c0_i32_1 = arith.constant 0 : i32
    return %c0_i32, %c0_i32_0 : i32, i32
  }
  func.func @transform_6(%arg0: i32) -> (i32, i32) {
    %c0_i32 = arith.constant 0 : i32
    %c0_i32_0 = arith.constant 0 : i32
    %c0_i32_1 = arith.constant 0 : i32
    return %c0_i32, %c0_i32_0 : i32, i32
  }
  func.func @transform_7(%arg0: i32) -> (i32, i32) {
    %c0_i32 = arith.constant 0 : i32
    %c0_i32_0 = arith.constant 0 : i32
    %c0_i32_1 = arith.constant 0 : i32
    return %c0_i32, %c0_i32_0 : i32, i32
  }
  func.func @transform_8(%arg0: i32) -> (i32, i32) {
    %c0_i32 = arith.constant 0 : i32
    %c0_i32_0 = arith.constant 0 : i32
    %c0_i32_1 = arith.constant 0 : i32
    return %c0_i32, %c0_i32_0 : i32, i32
  }
  func.func @transform_9(%arg0: i32) -> (i32, i32, i32) {
    %c0_i32 = arith.constant 0 : i32
    %c0_i32_0 = arith.constant 0 : i32
    %c0_i32_1 = arith.constant 0 : i32
    return %arg0, %c0_i32, %c0_i32_0 : i32, i32, i32
  }
}

</mosaic_0001>

<bundles_post_ra>
// kernel: tpu_custom_call.1
= control target key start
LH: loop header
LB: loop body
LE: loop exit
PB: predicated region body
PF: predicated region fallthrough
CT: control target
= control target key end

     0   :  { %14 = vsyncpa [#allocation3], 0  ;;  %s1069_s0 = inlined_call_operand.hbm [shape: f32[2,8,128], index: 0, kind: input, shape index: {}]   ;;  %s1070_s1 = inlined_call_operand.hbm [shape: bf16[128,128], index: 1, kind: input, shape index: {}]   ;;  %s1071_s2 = inlined_call_operand.vmem [shape: f32[1,128], index: 2, kind: input, shape index: {}]   ;;  %s1072_s3 = inlined_call_operand.hbm [shape: bf16[128,128], index: 3, kind: input, shape index: {}]   ;;  %s1073_s4 = inlined_call_operand.vmem [shape: f32[1,128], index: 4, kind: input, shape index: {}]   ;;  %s1074_s5 = inlined_call_operand.vmem [shape: f32[1,128], index: 5, kind: input, shape index: {}]   ;;  %s1075_s6 = inlined_call_operand.vmem [shape: f32[1,128], index: 6, kind: input, shape index: {}]   ;;  %s1076_s7 = inlined_call_operand.vmem [shape: f32[1,128], index: 7, kind: input, shape index: {}]   ;;  %s1077_s8 = inlined_call_operand.vmem [shape: f32[1,128], index: 8, kind: input, shape index: {}]   ;;  %s1078_s9 = inlined_call_operand.hbm [shape: f32[2,8,128], index: 9, kind: output, shape index: {}]  }
   0x1   :  { %15 = vsyncpa [#allocation6], 0 }
   0x2   :  { %16 = vsyncpa [#allocation4], 0  ;;  %s869_s30 = smov [#allocation5]   ;;  %s775_s13 = scalar_lea.hbm %s1070_s1, 1024 }
   0x3   :  { %s34_s10 = sshll.u32 %s869_s30, 4  ;;  %p776_p0 = scmp.ne.s32.totalorder %s1070_s1, %s775_s13  ;;  %s35_s10 = int_to_ptr.vmem [resolvable:$true] %s34_s10 }
   0x4   :  { %p779_p1 = scmp.lt.u32.totalorder %s775_s13, %s1070_s1 }
   0x6   :  { %p781_p2 = pnand %p779_p1, %p776_p0 }
   0x8   :  { %784 = shalt.err (!%p781_p2)
}
   0x9   :  { %s785_s18 = scalar_lea.vmem %s35_s10, 1024  ;;  %p790_p4 = scmp.lt.s32.totalorder %s35_s10, %s35_s10 }
   0xa   :  { %p786_p3 = scmp.ne.s32.totalorder %s35_s10, %s785_s18  ;;  %p791_p5 = scmp.lt.s32.totalorder %s785_s18, %s785_s18 }
   0xc   :  { %p792_p6 = por %p791_p5, %p790_p4 }
   0xe   :  { %p793_p7 = pnand %p792_p6, %p786_p3 }
  0x10   :  { %796 = shalt.err (!%p793_p7)
}
  0x11   :  { %s870_s19 = smov 64   ;;  %s871_s20 = smov 4  }
  0x12   :  { %40 = dma.hbm_to_vmem [thread:$0]  %s1070_s1, 1024, %s35_s10, [#allocation6], %s870_s19, %s870_s19, %s871_s20  }
  0x13   :  { %s872_s23 = smov [#allocation2]   ;;  %s797_s27 = scalar_lea.hbm %s1069_s0, 256 }
  0x14   :  { %s22_s24 = sshll.u32 %s872_s23, 4  ;;  %p798_p8 = scmp.ne.s32.totalorder %s1069_s0, %s797_s27  ;;  %s23_s24 = int_to_ptr.vmem [resolvable:$true] %s22_s24 }
  0x15   :  { %p801_p9 = scmp.lt.u32.totalorder %s797_s27, %s1069_s0 }
  0x17   :  { %p803_p10 = pnand %p801_p9, %p798_p8 }
  0x19   :  { %806 = shalt.err (!%p803_p10)
}
  0x1a   :  { %s807_s12 = scalar_lea.vmem %s23_s24, 256  ;;  %p812_p12 = scmp.lt.s32.totalorder %s23_s24, %s23_s24 }
  0x1b   :  { %p808_p11 = scmp.ne.s32.totalorder %s23_s24, %s807_s12  ;;  %p813_p13 = scmp.lt.s32.totalorder %s807_s12, %s807_s12 }
  0x1d   :  { %p814_p0 = por %p813_p13, %p812_p12 }
  0x1f   :  { %p815_p1 = pnand %p814_p0, %p808_p11 }
  0x21   :  { %818 = shalt.err (!%p815_p1)
}
  0x22   :  { %s873_s1 = smov 128   ;;  %s874_s10 = smov 8  }
  0x23   :  { %28 = dma.hbm_to_vmem [thread:$0]  %s1069_s0, 256, %s23_s24, [#allocation3], %s873_s1, %s873_s1, %s874_s10  }
  0x24   :  { %s875_s15 = smov [#allocation7]   ;;  %s819_s21 = scalar_lea.hbm %s1072_s3, 1024 }
  0x25   :  { %s48_s16 = sshll.u32 %s875_s15, 4  ;;  %p820_p2 = scmp.ne.s32.totalorder %s1072_s3, %s819_s21  ;;  %s49_s16 = int_to_ptr.vmem [resolvable:$true] %s48_s16 }
  0x26   :  { %p823_p3 = scmp.lt.u32.totalorder %s819_s21, %s1072_s3 }
  0x28   :  { %p825_p4 = pnand %p823_p3, %p820_p2 }
  0x2a   :  { %828 = shalt.err (!%p825_p4)
}
  0x2b   :  { %s829_s27 = scalar_lea.vmem %s49_s16, 1024  ;;  %p834_p6 = scmp.lt.s32.totalorder %s49_s16, %s49_s16 }
  0x2c   :  { %p830_p5 = scmp.ne.s32.totalorder %s49_s16, %s829_s27  ;;  %p835_p7 = scmp.lt.s32.totalorder %s829_s27, %s829_s27 }
  0x2e   :  { %p836_p8 = por %p835_p7, %p834_p6 }
  0x30   :  { %p837_p9 = pnand %p836_p8, %p830_p5 }
  0x32   :  { %840 = shalt.err (!%p837_p9)
}
  0x33   :  { %54 = dma.hbm_to_vmem [thread:$0]  %s1072_s3, 1024, %s49_s16, [#allocation6], %s870_s19, %s870_s19, %s871_s20  }
  0x34   :  { %863 = dma.done.wait [#allocation3], 256  }
  0x35   :  { %864 = vsyncadd [#allocation3], 4294967040 }
  0x36   :  { %865 = dma.done.wait [#allocation6], 2048  }
  0x37   :  { %866 = vsyncadd [#allocation6], 4294965248  ;;  %v876_v0 = vmov 0.0   ;;  %vm877_vm0 = vmmov 0   ;;  %v980_v1 = vld [vmem:[#allocation2] sm:$0xff]  ;;  %v982_v2 = vld [vmem:[#allocation2 + $0x8] sm:$0xff] }
  0x38   :  { %669 = vmatprep.subr.bf16.mxu0 %v876_v0  ;;  %675 = vmatprep.subr.bf16.mxu1 %v876_v0  ;;  %v83_v3 = vpack.c.bf16 %v980_v1, %v980_v1  ;;  %v84_v4 = vpack.c.bf16 %v982_v2, %v982_v2  ;;  %v79_v5 = vmul.f32 0.17677669, %v980_v1  ;;  %v80_v6 = vmul.f32 0.17677669, %v982_v2  ;;  %v743_v51 = vld [vmem:[#allocation5] sm:$0xff]   ;;  %v744_v52 = vld [vmem:[#allocation5 + $0x8] sm:$0xff]  }
  0x39   :  { %671 = vmatprep.mubr.msk.bf16.mxu0 %vm877_vm0, %v876_v0  ;;  %677 = vmatprep.mubr.msk.bf16.mxu1 %vm877_vm0, %v876_v0  ;;  %vm165_vm1 = vcmask 64512   ;;  %vm193_vm2 = vcmask 1043456   ;;  %v745_v53 = vld [vmem:[#allocation5 + $0x10] sm:$0xff]   ;;  %v746_v54 = vld [vmem:[#allocation5 + $0x18] sm:$0xff]   ;;  %v747_v55 = vld [vmem:[#allocation5 + $0x20] sm:$0xff]   ;;  %s878_s13 = smov [#allocation8]  }
  0x3a   :  { %670 = vmatpush3.bf16.xpose.msra.mxu0 %v83_v3  ;;  %676 = vmatpush3.bf16.xpose.msra.mxu1 %v84_v4  ;;  %v81_v7 = vpack.c.bf16 %v79_v5, %v79_v5  ;;  %v82_v8 = vpack.c.bf16 %v80_v6, %v80_v6  ;;  %v195_v29 = vsel %vm193_vm2, %v83_v3, 0  ;;  %v241_v30 = vsel %vm193_vm2, %v84_v4, 0  ;;  %v748_v56 = vld [vmem:[#allocation5 + $0x28] sm:$0xff]   ;;  %v749_v57 = vld [vmem:[#allocation5 + $0x30] sm:$0xff]   ;;  %v750_v58 = vld [vmem:[#allocation5 + $0x38] sm:$0xff]   ;;  %s606_s14 = sshll.u32 %s878_s13, 4  ;;  %s607_s14 = int_to_ptr.vmem [resolvable:$true] %s606_s14 }
  0x3b   :  { %681 = vmatprep.subr.bf16.mxu0 %v876_v0  ;;  %687 = vmatprep.subr.bf16.mxu1 %v876_v0  ;;  %v751_v59 = vld [vmem:[#allocation7] sm:$0xff]   ;;  %v752_v60 = vld [vmem:[#allocation7 + $0x8] sm:$0xff]   ;;  %v753_v61 = vld [vmem:[#allocation7 + $0x10] sm:$0xff]   ;;  %s841_s15 = scalar_lea.vmem %s607_s14, 256  ;;  %p846_p11 = scmp.lt.s32.totalorder %s607_s14, %s607_s14 }
  0x3c   :  { %v754_v62 = vld [vmem:[#allocation7 + $0x18] sm:$0xff]   ;;  %v755_v63 = vld [vmem:[#allocation7 + $0x20] sm:$0xff]   ;;  %p842_p10 = scmp.ne.s32.totalorder %s607_s14, %s841_s15  ;;  %p847_p12 = scmp.lt.s32.totalorder %s841_s15, %s841_s15 }
  0x3e   :  { %p848_p13 = por %p847_p12, %p846_p11 }
  0x40   :  { %p849_p0 = pnand %p848_p13, %p842_p10 }
  0x41   :  { %672 = vmatmul.mubr.bf16.vlgmr.msra.gmra.mrb[0].mxu0 %v81_v7  ;;  %678 = vmatmul.mubr.bf16.vlgmr.msra.gmra.mrb[0].mxu1 %v82_v8 }
  0x42   :  { %683 = vmatprep.mubr.msk.bf16.mxu0 %vm877_vm0, %v876_v0  ;;  %689 = vmatprep.mubr.msk.bf16.mxu1 %vm877_vm0, %v876_v0 }
  0x43   :  { %682 = vmatpush3.bf16.msra.mxu0 %v195_v29  ;;  %688 = vmatpush3.bf16.msra.mxu1 %v241_v30  ;;  %v757_v29 = vld [vmem:[#allocation7 + $0x30] sm:$0xff]   ;;  %v758_v30 = vld [vmem:[#allocation7 + $0x38] sm:$0xff]  }
  0x44   :  { %693 = vmatprep.subr.bf16.mxu0 %v876_v0  ;;  %713 = vmatprep.subr.bf16.mxu1 %v876_v0 }
 0x114   :  { %v119_v9 = vpop.f32.mrb[0].mxu0  ;;  %v159_v10 = vpop.f32.mrb[0].mxu1 }
 0x115   :  { %v673_v11 = vpop.f32.mrb[1].mxu0  ;;  %v679_v12 = vpop.f32.mrb[1].mxu1  ;;  %v166_v13 = vsel %vm165_vm1, %v119_v9, -inf  ;;  %v169_v18 = vsel %vm165_vm1, %v159_v10, -inf }
 0x116   :  { %167 = vmax.xlane.f32.xlu0 %v166_v13  ;;  %v122_v14 = vpop.f32.mrb[2].mxu0  ;;  %v162_v15 = vpop.f32.mrb[2].mxu1 }
 0x117   :  { %v674_v16 = vpop.f32.mrb[3].mxu0  ;;  %v680_v17 = vpop.f32.mrb[3].mxu1 }
 0x11a   :  { %170 = vmax.xlane.f32.xlu0 %v169_v18 }
 0x1a3   :  { %v168_v19 = vpop.xlane.xlu0 %167 }
 0x1a4   :  { %v172_v20 = vsub.f32 %v119_v9, %v168_v19  ;;  %v621_v19 = vld [vmem:[%s1074_s5] ss:$0 sm:$0xff] }
 0x1a6   :  { %v174_v21 = vmul.f32 1.442695, %v172_v20 }
 0x1a7   :  { %v171_v22 = vpop.xlane.xlu0 %170 }
 0x1a8   :  { %759 = vpow2.f32 %v174_v21  ;;  %v173_v23 = vsub.f32 %v159_v10, %v171_v22 }
 0x1aa   :  { %v176_v24 = vmul.f32 1.442695, %v173_v23 }
 0x1ac   :  { %761 = vpow2.f32 %v176_v24  ;;  %v622_v24 = vld [vmem:[%s1075_s6] ss:$0 sm:$0xff] }
 0x1b2   :  { %v760_v25 = vpop.eup %759 }
 0x1b3   :  { %v178_v26 = vsel %vm165_vm1, %v760_v25, 0.0 }
 0x1b4   :  { %179 = vadd.xlane.f32.xlu1 %v178_v26 }
 0x1b6   :  { %v762_v27 = vpop.eup %761 }
 0x1b7   :  { %v181_v28 = vsel %vm165_vm1, %v762_v27, 0.0 }
 0x1b8   :  { %182 = vadd.xlane.f32.xlu1 %v181_v28 }
 0x241   :  { %v180_v31 = vpop.xlane.xlu1 %179 }
 0x242   :  { %763 = vrcp.f32 %v180_v31  ;;  %v623_v31 = vld [vmem:[%s1071_s2] ss:$0 sm:$0xff] }
 0x245   :  { %v183_v32 = vpop.xlane.xlu1 %182 }
 0x246   :  { %765 = vrcp.f32 %v183_v32 }
 0x24c   :  { %v764_v33 = vpop.eup %763 }
 0x24d   :  { %v185_v34 = vmul.f32 %v764_v33, %v760_v25 }
 0x24f   :  { %v188_v35 = vpack.c.bf16 %v185_v34, %v185_v34 }
 0x250   :  { %v766_v36 = vpop.eup %765 }
 0x251   :  { %v187_v37 = vmul.f32 %v766_v36, %v762_v27  ;;  %684 = vmatmul.mubr.msk.bf16.vlgmr.msra.gmra.mrb[4].mxu0 %vm165_vm1, %v188_v35 }
 0x252   :  { %709 = vmatprep.mubr.msk.bf16.mxu0 %vm877_vm0, %v876_v0  ;;  %694 = vmatpush3.bf16.msra.mxu0 %v743_v51 }
 0x253   :  { %v189_v38 = vpack.c.bf16 %v187_v37, %v187_v37  ;;  %695 = vmatprep.subr.bf16.mxu0 %v876_v0 }
 0x255   :  { %690 = vmatmul.mubr.msk.bf16.vlgmr.msra.gmra.mrb[4].mxu1 %vm165_vm1, %v189_v38 }
 0x256   :  { %729 = vmatprep.mubr.msk.bf16.mxu1 %vm877_vm0, %v876_v0  ;;  %696 = vmatpush3.bf16.msra.mxu0 %v744_v52 }
 0x257   :  { %697 = vmatprep.subr.bf16.mxu0 %v876_v0  ;;  %714 = vmatpush3.bf16.msra.mxu1 %v751_v59 }
 0x258   :  { %715 = vmatprep.subr.bf16.mxu1 %v876_v0 }
 0x25a   :  { %698 = vmatpush3.bf16.msra.mxu0 %v745_v53 }
 0x25b   :  { %699 = vmatprep.subr.bf16.mxu0 %v876_v0  ;;  %716 = vmatpush3.bf16.msra.mxu1 %v752_v60 }
 0x25c   :  { %717 = vmatprep.subr.bf16.mxu1 %v876_v0 }
 0x25e   :  { %700 = vmatpush3.bf16.msra.mxu0 %v746_v54 }
 0x25f   :  { %701 = vmatprep.subr.bf16.mxu0 %v876_v0  ;;  %718 = vmatpush3.bf16.msra.mxu1 %v753_v61 }
 0x260   :  { %719 = vmatprep.subr.bf16.mxu1 %v876_v0 }
 0x262   :  { %702 = vmatpush3.bf16.msra.mxu0 %v747_v55 }
 0x263   :  { %703 = vmatprep.subr.bf16.mxu0 %v876_v0  ;;  %720 = vmatpush3.bf16.msra.mxu1 %v754_v62 }
 0x264   :  { %721 = vmatprep.subr.bf16.mxu1 %v876_v0 }
 0x266   :  { %704 = vmatpush3.bf16.msra.mxu0 %v748_v56 }
 0x267   :  { %705 = vmatprep.subr.bf16.mxu0 %v876_v0  ;;  %722 = vmatpush3.bf16.msra.mxu1 %v755_v63 }
 0x268   :  { %723 = vmatprep.subr.bf16.mxu1 %v876_v0 }
 0x26a   :  { %706 = vmatpush3.bf16.msra.mxu0 %v749_v57 }
 0x26b   :  { %707 = vmatprep.subr.bf16.mxu0 %v876_v0 }
 0x26e   :  { %708 = vmatpush3.bf16.msra.mxu0 %v750_v58 }
 0x324   :  { %v231_v39 = vpop.f32.mrb[4].mxu0 }
 0x325   :  { %v1009_v40 = vadd.f32 %v231_v39, %v980_v1  ;;  %v685_v41 = vpop.f32.mrb[5].mxu0  ;;  %v756_v1 = vld [vmem:[#allocation7 + $0x28] sm:$0xff]  }
 0x326   :  { %v234_v42 = vpop.f32.mrb[6].mxu0  ;;  %724 = vmatpush3.bf16.msra.mxu1 %v756_v1 }
 0x327   :  { %283 = vadd.xlane.f32.xlu0 %v1009_v40  ;;  %v686_v43 = vpop.f32.mrb[7].mxu0  ;;  %v289_v47 = vmul.f32 %v1009_v40, %v1009_v40  ;;  %725 = vmatprep.subr.bf16.mxu1 %v876_v0 }
 0x328   :  { %v277_v44 = vpop.f32.mrb[4].mxu1 }
 0x329   :  { %v1013_v45 = vadd.f32 %v277_v44, %v982_v2  ;;  %v691_v46 = vpop.f32.mrb[5].mxu1 }
 0x32a   :  { %v280_v48 = vpop.f32.mrb[6].mxu1  ;;  %726 = vmatpush3.bf16.msra.mxu1 %v757_v29 }
 0x32b   :  { %285 = vadd.xlane.f32.xlu1 %v1013_v45  ;;  %v692_v49 = vpop.f32.mrb[7].mxu1  ;;  %291 = vadd.xlane.f32.xlu0 %v289_v47  ;;  %v290_v50 = vmul.f32 %v1013_v45, %v1013_v45 }
 0x32c   :  { %727 = vmatprep.subr.bf16.mxu1 %v876_v0  ;;  %v632_v0 = vld [vmem:[%s1073_s4] ss:$0 sm:$0xff] }
 0x32e   :  { %728 = vmatpush3.bf16.msra.mxu1 %v758_v30 }
 0x32f   :  { %293 = vadd.xlane.f32.xlu1 %v290_v50 }
 0x3b4   :  { %v284_v2 = vpop.xlane.xlu0 %283 }
 0x3b5   :  { %v287_v3 = vmul.f32 0.03125, %v284_v2 }
 0x3b7   :  { %v297_v6 = vmul.f32 %v287_v3, %v287_v3  ;;  %v301_v16 = vsub.f32 %v1009_v40, %v287_v3 }
 0x3b8   :  { %v286_v4 = vpop.xlane.xlu1 %285  ;;  %v292_v5 = vpop.xlane.xlu0 %291 }
 0x3b9   :  { %v288_v7 = vmul.f32 0.03125, %v286_v4  ;;  %v295_v8 = vmul.f32 0.03125, %v292_v5  ;;  %v641_v4 = vld [vmem:[%s1076_s7] ss:$0 sm:$0xff] }
 0x3bb   :  { %v299_v9 = vsub.f32 %v295_v8, %v297_v6  ;;  %v298_v11 = vmul.f32 %v288_v7, %v288_v7  ;;  %v302_v20 = vsub.f32 %v1013_v45, %v288_v7  ;;  %v642_v8 = vld [vmem:[%s1077_s8] ss:$0 sm:$0xff] }
 0x3bc   :  { %v294_v10 = vpop.xlane.xlu1 %293 }
 0x3bd   :  { %v303_v12 = vadd.f32 1e-05, %v299_v9  ;;  %v296_v13 = vmul.f32 0.03125, %v294_v10 }
 0x3bf   :  { %767 = vrsqrt.f32 %v303_v12  ;;  %v300_v14 = vsub.f32 %v296_v13, %v298_v11 }
 0x3c1   :  { %v304_v15 = vadd.f32 1e-05, %v300_v14 }
 0x3c3   :  { %769 = vrsqrt.f32 %v304_v15 }
 0x3c9   :  { %v768_v17 = vpop.eup %767 }
 0x3ca   :  { %v307_v18 = vmul.f32 %v768_v17, %v301_v16 }
 0x3cc   :  { %v315_v23 = vmul.f32 %v621_v19, %v307_v18 }
 0x3cd   :  { %v770_v21 = vpop.eup %769 }
 0x3ce   :  { %v308_v22 = vmul.f32 %v770_v21, %v302_v20  ;;  %v323_v26 = vadd.f32 %v622_v24, %v315_v23 }
 0x3d0   :  { %v316_v25 = vmul.f32 %v621_v19, %v308_v22 }
 0x3d2   :  { %v324_v27 = vadd.f32 %v622_v24, %v316_v25 }
 0x3d4   :  { %v325_v28 = vpack.c.bf16 %v324_v27, %v323_v26 }
 0x3d6   :  { %710 = vmatmul.mubr.bf16.vlgmr.msra.gmra.mrb[8].mxu0 %v325_v28 }
 0x4a9   :  { %v431_v32 = vpop.f32.mrb[8].mxu0 }
 0x4aa   :  { %v432_v33 = vadd.f32 %v623_v31, %v431_v32  ;;  %v711_v34 = vpop.f32.mrb[9].mxu0 }
 0x4ab   :  { %v434_v35 = vpop.f32.mrb[10].mxu0 }
 0x4ac   :  { %v435_v36 = vadd.f32 %v623_v31, %v434_v35  ;;  %v712_v37 = vpop.f32.mrb[11].mxu0  ;;  %v438_v38 = vmax.f32 %v432_v33, 0.0 }
 0x4ae   :  { %v439_v39 = vmax.f32 %v435_v36, 0.0 }
 0x4b0   :  { %v440_v40 = vpack.c.bf16 %v439_v39, %v438_v38 }
 0x4b2   :  { %730 = vmatmul.mubr.bf16.vlgmr.msra.gmra.mrb[8].mxu1 %v440_v40 }
 0x585   :  { %v546_v41 = vpop.f32.mrb[8].mxu1 }
 0x586   :  { %v547_v42 = vadd.f32 %v632_v0, %v546_v41  ;;  %v731_v43 = vpop.f32.mrb[9].mxu1 }
 0x587   :  { %v549_v44 = vpop.f32.mrb[10].mxu1 }
 0x588   :  { %v553_v45 = vadd.f32 %v547_v42, %v323_v26  ;;  %v550_v46 = vadd.f32 %v632_v0, %v549_v44  ;;  %v732_v47 = vpop.f32.mrb[11].mxu1 }
 0x58a   :  { %v554_v48 = vadd.f32 %v550_v46, %v324_v27  ;;  %557 = vadd.xlane.f32.xlu0 %v553_v45  ;;  %v563_v49 = vmul.f32 %v553_v45, %v553_v45 }
 0x58c   :  { %559 = vadd.xlane.f32.xlu1 %v554_v48  ;;  %v564_v50 = vmul.f32 %v554_v48, %v554_v48 }
 0x58e   :  { %565 = vadd.xlane.f32.xlu0 %v563_v49 }
 0x590   :  { %567 = vadd.xlane.f32.xlu1 %v564_v50 }
 0x617   :  { %v558_v51 = vpop.xlane.xlu0 %557 }
 0x618   :  { %v561_v52 = vmul.f32 0.03125, %v558_v51 }
 0x619   :  { %v560_v53 = vpop.xlane.xlu1 %559 }
 0x61a   :  { %v562_v54 = vmul.f32 0.03125, %v560_v53  ;;  %v571_v56 = vmul.f32 %v561_v52, %v561_v52  ;;  %v575_v2 = vsub.f32 %v553_v45, %v561_v52 }
 0x61b   :  { %v566_v55 = vpop.xlane.xlu0 %565 }
 0x61c   :  { %v569_v57 = vmul.f32 0.03125, %v566_v55  ;;  %v572_v59 = vmul.f32 %v562_v54, %v562_v54  ;;  %v576_v5 = vsub.f32 %v554_v48, %v562_v54 }
 0x61d   :  { %v568_v58 = vpop.xlane.xlu1 %567 }
 0x61e   :  { %v573_v60 = vsub.f32 %v569_v57, %v571_v56  ;;  %v570_v61 = vmul.f32 0.03125, %v568_v58 }
 0x620   :  { %v577_v62 = vadd.f32 1e-05, %v573_v60  ;;  %v574_v63 = vsub.f32 %v570_v61, %v572_v59 }
 0x622   :  { %771 = vrsqrt.f32 %v577_v62  ;;  %v578_v1 = vadd.f32 1e-05, %v574_v63 }
 0x624   :  { %773 = vrsqrt.f32 %v578_v1 }
 0x62c   :  { %v772_v3 = vpop.eup %771 }
 0x62d   :  { %v581_v6 = vmul.f32 %v772_v3, %v575_v2 }
 0x62e   :  { %v774_v7 = vpop.eup %773 }
 0x62f   :  { %v582_v9 = vmul.f32 %v774_v7, %v576_v5  ;;  %v589_v10 = vmul.f32 %v641_v4, %v581_v6 }
 0x631   :  { %v590_v11 = vmul.f32 %v641_v4, %v582_v9  ;;  %v597_v12 = vadd.f32 %v642_v8, %v589_v10 }
 0x633   :  { %v598_v13 = vadd.f32 %v642_v8, %v590_v11  ;;  %599 = vst [vmem:[#allocation8] sm:$0xff] %v597_v12 }
 0x635   :  { %600 = vst [vmem:[#allocation8 + $0x8] sm:$0xff] %v598_v13 }
 0x636   :  { %852 = shalt.err (!%p849_p0)
}
 0x637   :  { %s853_s8 = scalar_lea.hbm %s1078_s9, 256 }
 0x638   :  { %p854_p1 = scmp.ne.s32.totalorder %s1078_s9, %s853_s8  ;;  %p857_p2 = scmp.lt.u32.totalorder %s853_s8, %s1078_s9 }
 0x63a   :  { %p859_p3 = pnand %p857_p2, %p854_p1 }
 0x63c   :  { %862 = shalt.err (!%p859_p3)
}
 0x63d   :  { %612 = dma.vmem_to_hbm [thread:$0]  %s607_s14, 256, %s1078_s9, [#allocation4], %s873_s1, %s873_s1, %s874_s10  }
 0x63e   :  { %867 = dma.done.wait [#allocation4], 256  }
 0x63f   :  { %868 = vsyncadd [#allocation4], 4294967040 }
 0x640   :  { %616 = vsyncpa [#allocation3], 1 }
 0x641   :  { %617 = vsyncpa [#allocation6], 1 }
 0x642   :  { %618 = vsyncpa [#allocation4], 1 }

</bundles_post_ra>
